<compile_context>
chip_gen: v7x
topology: tpu7x:2x2x1
jax: 0.10.0
libtpu: 0.0.40
codegen_flags: <defaults>
</compile_context>

<pallas_src>
import math

import jax
import jax.numpy as jnp
from jax import lax
from jax.experimental import pallas as pl
from jax.experimental.pallas import tpu as pltpu


def simmetry_mlp_kernel(x_ref, w1_ref, b1_ref, w2_ref, b2_ref, w3_ref, b3_ref, o_ref):
    # x_ref : (TILE_B, IN)  bf16   batch-major input tile (contiguous HBM DMA)
    # w1_ref: (H1, IN)      bf16   PyTorch (out, in) layout
    # w2_ref: (H2, H1)      bf16   PyTorch (out, in) layout
    # w3_ref: (H2, 1) f32  if num_classes == 1   else  (C, H2) bf16
    # b*_ref: (out, 1)      f32    column biases (broadcast along lanes)
    # o_ref : (C, TILE_B)   f32    lane-dense output slab (batch on lanes)
    num_classes = o_ref.shape[0]

    x = x_ref[...]
    # Biases read once (hoisted) — keeps broadcasts out of any future inner loop.
    b1 = b1_ref[...]
    b2 = b2_ref[...]
    b3 = b3_ref[...]

    # Layer 1: h1ᵀ = relu(W1 · xᵀ + b1), computed directly in feature-major form via a
    # dot_general contracting the last dim of both operands ("NT" form) — no explicit
    # transpose of x is ever materialized.
    h1t = lax.dot_general(w1_ref[...], x, (((1,), (1,)), ((), ())),
                          preferred_element_type=jnp.float32)        # (H1, TILE_B) f32
    h1t = jnp.maximum(h1t + b1, 0.0)

    # Layer 2: h2ᵀ = relu(W2 · h1ᵀ + b2)
    h2t = jnp.dot(w2_ref[...], h1t.astype(jnp.bfloat16),
                  preferred_element_type=jnp.float32)                # (H2, TILE_B) f32
    h2t = jnp.maximum(h2t + b2, 0.0)

    # Output layer.
    if num_classes == 1:
        # N=1 MXU matmul wastes the result path; use VPU mul + XLU sublane reduce.
        z = jnp.sum(h2t * w3_ref[...], axis=0, keepdims=True) + b3   # (1, TILE_B)
    else:
        z = jnp.dot(w3_ref[...], h2t.astype(jnp.bfloat16),
                    preferred_element_type=jnp.float32) + b3         # (C, TILE_B)

    # Softmax over the class axis (dim=1 of the original (B, C) tensor == axis 0 here).
    # With num_classes == 1 this is the constant 1.0 — kept for faithfulness.
    m = jnp.max(z, axis=0, keepdims=True)
    e = jnp.exp(z - m)
    inv = pl.reciprocal(jnp.sum(e, axis=0, keepdims=True), approx=True)
    o_ref[...] = e * inv


def _round_up(n, m):
    return ((n + m - 1) // m) * m


def simmetry_mlp(x, w1, b1, w2, b2, w3, b3, *, block_b=1024):
    """Forward pass.  Parameters use PyTorch nn.Linear layout:
       w1 (H1, IN), b1 (H1,), w2 (H2, H1), b2 (H2,), w3 (C, H2), b3 (C,)."""
    batch, in_features = x.shape
    h1_dim = w1.shape[0]
    h2_dim = w2.shape[0]
    num_classes = w3.shape[0]

    # Batch tile: multiple of 128 (lane-dense output slab), capped by block_b.
    tile_b = min(block_b, _round_up(max(batch, 1), 128))
    b_pad = _round_up(batch, tile_b)
    if b_pad != batch:
        x = jnp.pad(x, ((0, b_pad - batch), (0, 0)))

    # bf16 MXU operands; biases / accumulation / epilogue stay f32.
    x_k = x.astype(jnp.bfloat16)
    w1_k = w1.astype(jnp.bfloat16)
    w2_k = w2.astype(jnp.bfloat16)
    b1_k = b1.astype(jnp.float32).reshape(h1_dim, 1)
    b2_k = b2.astype(jnp.float32).reshape(h2_dim, 1)
    b3_k = b3.astype(jnp.float32).reshape(num_classes, 1)
    if num_classes == 1:
        w3_k = w3.astype(jnp.float32).reshape(h2_dim, 1)   # column for the VPU/XLU reduce
    else:
        w3_k = w3.astype(jnp.bfloat16)                     # (C, H2) for an MXU matmul

    resident = lambda i: (0, 0)   # same block every grid step -> stays VMEM-resident

    out_t = pl.pallas_call(
        simmetry_mlp_kernel,
        out_shape=jax.ShapeDtypeStruct((num_classes, b_pad), jnp.float32),
        grid=(b_pad // tile_b,),
        in_specs=[
            pl.BlockSpec((tile_b, in_features), lambda i: (i, 0)),   # x: pipelined over batch
            pl.BlockSpec(w1_k.shape, resident),
            pl.BlockSpec(b1_k.shape, resident),
            pl.BlockSpec(w2_k.shape, resident),
            pl.BlockSpec(b2_k.shape, resident),
            pl.BlockSpec(w3_k.shape, resident),
            pl.BlockSpec(b3_k.shape, resident),
        ],
        out_specs=pl.BlockSpec((num_classes, tile_b), lambda i: (0, i)),  # lane-dense
        compiler_params=pltpu.CompilerParams(
            dimension_semantics=("parallel",),   # megacore sharding on v7x; no-op elsewhere
        ),
    )(x_k, w1_k, b1_k, w2_k, b2_k, w3_k, b3_k)

    # Layout plumbing only: (C, B_pad) lane-dense slab -> (B, C).
    return out_t.T[:batch]


if __name__ == "__main__":
    input_size = 8
    hidden_sizes = (256, 64)
    num_classes = 1
    batch = 200   # deliberately not a multiple of 128 to exercise the pad/slice path

    def _init_linear(key, fan_in, fan_out):
        # Mimics nn.Linear's U(-1/sqrt(fan_in), 1/sqrt(fan_in)) init, PyTorch layout.
        kw, kb = jax.random.split(key)
        bound = 1.0 / math.sqrt(fan_in)
        w = jax.random.uniform(kw, (fan_out, fan_in), jnp.float32, -bound, bound)
        b = jax.random.uniform(kb, (fan_out,), jnp.float32, -bound, bound)
        return w, b

    root = jax.random.PRNGKey(0)
    kx, k1, k2, k3 = jax.random.split(root, 4)

    x = jax.random.normal(kx, (batch, input_size), jnp.float32)
    w1, b1 = _init_linear(k1, input_size, hidden_sizes[0])
    w2, b2 = _init_linear(k2, hidden_sizes[0], hidden_sizes[1])
    w3, b3 = _init_linear(k3, hidden_sizes[1], num_classes)

    fwd = jax.jit(simmetry_mlp)
    out = jax.block_until_ready(fwd(x, w1, b1, w2, b2, w3, b3))

    # Plain-JAX f32 reference.  With num_classes=1, softmax(dim=1) is exactly 1.0.
    h1 = jnp.maximum(x @ w1.T + b1, 0.0)
    h2 = jnp.maximum(h1 @ w2.T + b2, 0.0)
    logits = h2 @ w3.T + b3
    ref = jax.nn.softmax(logits, axis=-1)

    assert out.shape == (batch, num_classes), out.shape
    assert jnp.allclose(out, ref, atol=2e-3, rtol=2e-3), (out, ref)
    print("KERNEL_OK")
</pallas_src>

<mosaic_0001>
module attributes {stable_mosaic.version = 11 : i64} {
  func.func @simmetry_mlp_kernel(%arg0: i32, %arg1: memref<256x8xbf16, #tpu.memory_space<vmem>>, %arg2: memref<256x8xbf16, #tpu.memory_space<vmem>>, %arg3: memref<256x1xf32, #tpu.memory_space<vmem>>, %arg4: memref<64x256xbf16, #tpu.memory_space<vmem>>, %arg5: memref<64x1xf32, #tpu.memory_space<vmem>>, %arg6: memref<64x1xf32, #tpu.memory_space<vmem>>, %arg7: memref<1x1xf32, #tpu.memory_space<vmem>>, %arg8: memref<1x256xf32, #tpu.memory_space<vmem>>) attributes {dimension_semantics = [#tpu.dimension_semantics<parallel>], iteration_bounds = array<i64: 1>, scalar_prefetch = 0 : i64, scratch_operands = 0 : i64, tpu.core_type = #tpu.core_type<tc>, window_params = [{transform_indices = @transform_0, window_bounds = array<i64: 256, 8>}, {pipeline_mode = #tpu.pipeline_mode<synchronous>, transform_indices = @transform_1, window_bounds = array<i64: 256, 8>}, {pipeline_mode = #tpu.pipeline_mode<synchronous>, transform_indices = @transform_2, window_bounds = array<i64: 256, 1>}, {pipeline_mode = #tpu.pipeline_mode<synchronous>, transform_indices = @transform_3, window_bounds = array<i64: 64, 256>}, {pipeline_mode = #tpu.pipeline_mode<synchronous>, transform_indices = @transform_4, window_bounds = array<i64: 64, 1>}, {pipeline_mode = #tpu.pipeline_mode<synchronous>, transform_indices = @transform_5, window_bounds = array<i64: 64, 1>}, {pipeline_mode = #tpu.pipeline_mode<synchronous>, transform_indices = @transform_6, window_bounds = array<i64: 1, 1>}, {transform_indices = @transform_7, window_bounds = array<i64: 1, 256>}]} {
    %c0 = arith.constant 0 : index
    %c0_0 = arith.constant 0 : index
    %0 = vector.load %arg1[%c0, %c0_0] : memref<256x8xbf16, #tpu.memory_space<vmem>>, vector<256x8xbf16>
    %c0_1 = arith.constant 0 : index
    %c0_2 = arith.constant 0 : index
    %1 = vector.load %arg3[%c0_1, %c0_2] : memref<256x1xf32, #tpu.memory_space<vmem>>, vector<256x1xf32>
    %c0_3 = arith.constant 0 : index
    %c0_4 = arith.constant 0 : index
    %2 = vector.load %arg5[%c0_3, %c0_4] : memref<64x1xf32, #tpu.memory_space<vmem>>, vector<64x1xf32>
    %c0_5 = arith.constant 0 : index
    %c0_6 = arith.constant 0 : index
    %3 = vector.load %arg7[%c0_5, %c0_6] : memref<1x1xf32, #tpu.memory_space<vmem>>, vector<1x1xf32>
    %c0_7 = arith.constant 0 : index
    %c0_8 = arith.constant 0 : index
    %4 = vector.load %arg2[%c0_7, %c0_8] : memref<256x8xbf16, #tpu.memory_space<vmem>>, vector<256x8xbf16>
    %cst = arith.constant dense<0.000000e+00> : vector<256x256xf32>
    %5 = tpu.matmul %4, %0, %cst {dimension_numbers = #tpu.dot_dimension_numbers<[1], [1], [0], [0], [0, 0, 1, 0], [], []>} : vector<256x8xbf16>, vector<256x8xbf16>, vector<256x256xf32> -> vector<256x256xf32>
    %6 = vector.broadcast %1 : vector<256x1xf32> to vector<256x256xf32>
    %7 = arith.addf %5, %6 : vector<256x256xf32>
    %cst_9 = arith.constant 0.000000e+00 : f32
    %8 = vector.broadcast %cst_9 : f32 to vector<256x256xf32>
    %9 = arith.maximumf %7, %8 : vector<256x256xf32>
    %c0_10 = arith.constant 0 : index
    %c0_11 = arith.constant 0 : index
    %10 = vector.load %arg4[%c0_10, %c0_11] : memref<64x256xbf16, #tpu.memory_space<vmem>>, vector<64x256xbf16>
    %11 = arith.truncf %9 : vector<256x256xf32> to vector<256x256xbf16>
    %cst_12 = arith.constant dense<0.000000e+00> : vector<64x256xf32>
    %12 = tpu.matmul %10, %11, %cst_12 {dimension_numbers = #tpu.dot_dimension_numbers<[1], [0], [0], [1], [0, 0, 1, 1], [], []>} : vector<64x256xbf16>, vector<256x256xbf16>, vector<64x256xf32> -> vector<64x256xf32>
    %13 = vector.broadcast %2 : vector<64x1xf32> to vector<64x256xf32>
    %14 = arith.addf %12, %13 : vector<64x256xf32>
    %cst_13 = arith.constant 0.000000e+00 : f32
    %15 = vector.broadcast %cst_13 : f32 to vector<64x256xf32>
    %16 = arith.maximumf %14, %15 : vector<64x256xf32>
    %c0_14 = arith.constant 0 : index
    %c0_15 = arith.constant 0 : index
    %17 = vector.load %arg6[%c0_14, %c0_15] : memref<64x1xf32, #tpu.memory_space<vmem>>, vector<64x1xf32>
    %18 = vector.broadcast %17 : vector<64x1xf32> to vector<64x256xf32>
    %19 = arith.mulf %16, %18 : vector<64x256xf32>
    %cst_16 = arith.constant dense<0.000000e+00> : vector<256xf32>
    %20 = vector.multi_reduction <add>, %19, %cst_16 [0] : vector<64x256xf32> to vector<256xf32>
    %21 = vector.shape_cast %20 : vector<256xf32> to vector<1x256xf32>
    %22 = vector.broadcast %3 : vector<1x1xf32> to vector<1x256xf32>
    %23 = arith.addf %21, %22 : vector<1x256xf32>
    %cst_17 = arith.constant dense<0xFF800000> : vector<256xf32>
    %24 = vector.multi_reduction <maximumf>, %23, %cst_17 [0] : vector<1x256xf32> to vector<256xf32>
    %25 = vector.shape_cast %24 : vector<256xf32> to vector<1x256xf32>
    %26 = arith.subf %23, %25 : vector<1x256xf32>
    %27 = math.exp %26 : vector<1x256xf32>
    %cst_18 = arith.constant dense<0.000000e+00> : vector<256xf32>
    %28 = vector.multi_reduction <add>, %27, %cst_18 [0] : vector<1x256xf32> to vector<256xf32>
    %29 = vector.shape_cast %28 : vector<256xf32> to vector<1x256xf32>
    %30 = tpu.reciprocal %29 {approx = true} : vector<1x256xf32> -> vector<1x256xf32>
    %31 = arith.mulf %27, %30 : vector<1x256xf32>
    %c0_19 = arith.constant 0 : index
    %c0_20 = arith.constant 0 : index
    %32 = vector.load %arg8[%c0_19, %c0_20] : memref<1x256xf32, #tpu.memory_space<vmem>>, vector<1x256xf32>
    tpu.vector_store %arg8[%c0_19, %c0_20], %31 {strides = array<i32>} : memref<1x256xf32, #tpu.memory_space<vmem>>, vector<1x256xf32>,
    return
  }
  func.func @transform_0(%arg0: i32) -> (i32, i32) {
    %c0_i32 = arith.constant 0 : i32
    %c0_i32_0 = arith.constant 0 : i32
    return %arg0, %c0_i32 : i32, i32
  }
  func.func @transform_1(%arg0: i32) -> (i32, i32) {
    %c0_i32 = arith.constant 0 : i32
    %c0_i32_0 = arith.constant 0 : i32
    %c0_i32_1 = arith.constant 0 : i32
    return %c0_i32, %c0_i32_0 : i32, i32
  }
  func.func @transform_2(%arg0: i32) -> (i32, i32) {
    %c0_i32 = arith.constant 0 : i32
    %c0_i32_0 = arith.constant 0 : i32
    %c0_i32_1 = arith.constant 0 : i32
    return %c0_i32, %c0_i32_0 : i32, i32
  }
  func.func @transform_3(%arg0: i32) -> (i32, i32) {
    %c0_i32 = arith.constant 0 : i32
    %c0_i32_0 = arith.constant 0 : i32
    %c0_i32_1 = arith.constant 0 : i32
    return %c0_i32, %c0_i32_0 : i32, i32
  }
  func.func @transform_4(%arg0: i32) -> (i32, i32) {
    %c0_i32 = arith.constant 0 : i32
    %c0_i32_0 = arith.constant 0 : i32
    %c0_i32_1 = arith.constant 0 : i32
    return %c0_i32, %c0_i32_0 : i32, i32
  }
  func.func @transform_5(%arg0: i32) -> (i32, i32) {
    %c0_i32 = arith.constant 0 : i32
    %c0_i32_0 = arith.constant 0 : i32
    %c0_i32_1 = arith.constant 0 : i32
    return %c0_i32, %c0_i32_0 : i32, i32
  }
  func.func @transform_6(%arg0: i32) -> (i32, i32) {
    %c0_i32 = arith.constant 0 : i32
    %c0_i32_0 = arith.constant 0 : i32
    %c0_i32_1 = arith.constant 0 : i32
    return %c0_i32, %c0_i32_0 : i32, i32
  }
  func.func @transform_7(%arg0: i32) -> (i32, i32) {
    %c0_i32 = arith.constant 0 : i32
    %c0_i32_0 = arith.constant 0 : i32
    return %c0_i32, %arg0 : i32, i32
  }
}

</mosaic_0001>

<bundles_post_ra>
// kernel: simmetry_mlp.1
= control target key start
LH: loop header
LB: loop body
LE: loop exit
PB: predicated region body
PF: predicated region fallthrough
CT: control target
= control target key end

     0   :  { %vm454_vm0 = vcmask 64512   ;;  %v1325_v1 = vmov 0   ;;  %s1689_s0 = inlined_call_operand.vmem [shape: bf16[256,8], index: 0, kind: input, shape index: {}]   ;;  %s1690_s1 = inlined_call_operand.vmem [shape: bf16[256,8], index: 1, kind: input, shape index: {}]   ;;  %s1691_s2 = inlined_call_operand.vmem [shape: f32[256,1], index: 2, kind: input, shape index: {}]   ;;  %s1692_s6 = inlined_call_operand.<no memory space> [shape: f32[1,1], index: 6, kind: input, shape index: {}]   ;;  %s1693_s4 = inlined_call_operand.vmem [shape: f32[64,1], index: 4, kind: input, shape index: {}]   ;;  %s1694_s5 = inlined_call_operand.vmem [shape: f32[64,1], index: 5, kind: input, shape index: {}]   ;;  %s1695_s3 = inlined_call_operand.vmem [shape: bf16[64,256], index: 3, kind: input, shape index: {}]   ;;  %s1696_s7 = inlined_call_operand.vmem [shape: f32[1,256], index: 7, kind: output, shape index: {}]  }
   0x1   :  { %v1273_v0 = vld [vmem:[%s1689_s0 + $0x40] sm:$0xff]   ;;  %1271 = vset.pattern.permute.xlu0 %v1325_v1  ;;  %1272 = vset.pattern.permute.xlu1 %v1325_v1  ;;  %v1275_v3 = vld [vmem:[%s1689_s0 + $0x48] sm:$0xff]   ;;  %v1277_v7 = vld [vmem:[%s1689_s0 + $0x50] sm:$0xff]   ;;  %v12_v47 = vstv %s1692_s6 }
   0x2   :  { %v1274_v2 = vld [vmem:[%s1689_s0] sm:$0xff]   ;;  %1261 = vmatprep.subr.msk.bf16.mxu0 %vm454_vm0, %v1273_v0  ;;  %v1276_v5 = vld [vmem:[%s1689_s0 + $0x8] sm:$0xff]   ;;  %v1278_v8 = vld [vmem:[%s1689_s0 + $0x10] sm:$0xff]   ;;  %13 = vst [vmem:[#allocation2] sm:$0x1] %v12_v47 }
   0x3   :  { %v504_v4 = vsel %vm454_vm0, %v1274_v2, 0  ;;  %v507_v6 = vsel %vm454_vm0, %v1276_v5, 0  ;;  %v1393_v9 = vld [vmem:[%s1690_s1] sm:$0xff]   ;;  %v510_v10 = vsel %vm454_vm0, %v1278_v8, 0  ;;  %v1279_v11 = vld [vmem:[%s1689_s0 + $0x58] sm:$0xff]   ;;  %v63_v14 = vld [vmem:[%s1691_s2 + $0x10] sm:$0xff] }
   0x4   :  { %1214 = vmatpush3.bf16.xpose.msra.mxu0 %v504_v4  ;;  %1229 = vmatprep.mubr.msk.bf16.mxu0 %vm454_vm0, %v1393_v9  ;;  %v1280_v12 = vld [vmem:[%s1689_s0 + $0x18] sm:$0xff]   ;;  %v61_v13 = vld [vmem:[%s1691_s2] sm:$0xff]  ;;  %v62_v15 = vld [vmem:[%s1691_s2 + $0x8] sm:$0xff] }
   0x5   :  { %1262 = vmatprep.subr.msk.bf16.mxu0 %vm454_vm0, %v1275_v3  ;;  %136 = vperm.xlu0 %1271, %v61_v13   ;;  %v513_v16 = vsel %vm454_vm0, %v1280_v12, 0  ;;  %v1281_v17 = vld [vmem:[%s1689_s0 + $0x60] sm:$0xff]   ;;  %v64_v18 = vld [vmem:[%s1691_s2 + $0x18] sm:$0xff]  ;;  %v66_v21 = vld [vmem:[%s1691_s2 + $0x28] sm:$0xff] }
   0x6   :  { %146 = vperm.xlu1 %1272, %v63_v14   ;;  %v1282_v19 = vld [vmem:[%s1689_s0 + $0x20] sm:$0xff]   ;;  %v67_v22 = vld [vmem:[%s1691_s2 + $0x30] sm:$0xff]  ;;  %v1283_v24 = vld [vmem:[%s1689_s0 + $0x68] sm:$0xff]  }
   0x7   :  { %v65_v20 = vld [vmem:[%s1691_s2 + $0x20] sm:$0xff]  ;;  %v516_v23 = vsel %vm454_vm0, %v1282_v19, 0  ;;  %v68_v25 = vld [vmem:[%s1691_s2 + $0x38] sm:$0xff]  ;;  %v1284_v27 = vld [vmem:[%s1689_s0 + $0x28] sm:$0xff]  }
   0x8   :  { %v69_v26 = vld [vmem:[%s1691_s2 + $0x40] sm:$0xff]  ;;  %v70_v28 = vld [vmem:[%s1691_s2 + $0x48] sm:$0xff]  ;;  %v71_v29 = vld [vmem:[%s1691_s2 + $0x50] sm:$0xff]  ;;  %v519_v30 = vsel %vm454_vm0, %v1284_v27, 0 }
   0x9   :  { %141 = vperm.xlu0 %1271, %v62_v15   ;;  %v1285_v31 = vld [vmem:[%s1689_s0 + $0x70] sm:$0xff]   ;;  %v72_v32 = vld [vmem:[%s1691_s2 + $0x58] sm:$0xff]  ;;  %v73_v33 = vld [vmem:[%s1691_s2 + $0x60] sm:$0xff] }
   0xa   :  { %151 = vperm.xlu1 %1272, %v64_v18   ;;  %v1286_v34 = vld [vmem:[%s1689_s0 + $0x30] sm:$0xff]   ;;  %v74_v35 = vld [vmem:[%s1691_s2 + $0x68] sm:$0xff]  ;;  %v1287_v38 = vld [vmem:[%s1689_s0 + $0x78] sm:$0xff]  }
   0xb   :  { %v75_v36 = vld [vmem:[%s1691_s2 + $0x70] sm:$0xff]  ;;  %v522_v37 = vsel %vm454_vm0, %v1286_v34, 0  ;;  %v76_v39 = vld [vmem:[%s1691_s2 + $0x78] sm:$0xff]  ;;  %v77_v40 = vld [vmem:[%s1691_s2 + $0x80] sm:$0xff] }
   0xc   :  { %1216 = vmatpush3.bf16.xpose.msra.mxu0 %v507_v6  ;;  %v1288_v41 = vld [vmem:[%s1689_s0 + $0x38] sm:$0xff]   ;;  %v78_v42 = vld [vmem:[%s1691_s2 + $0x88] sm:$0xff]  ;;  %v79_v43 = vld [vmem:[%s1691_s2 + $0x90] sm:$0xff] }
   0xd   :  { %1263 = vmatprep.subr.msk.bf16.mxu0 %vm454_vm0, %v1277_v7  ;;  %156 = vperm.xlu0 %1271, %v65_v20   ;;  %v525_v44 = vsel %vm454_vm0, %v1288_v41, 0  ;;  %v80_v45 = vld [vmem:[%s1691_s2 + $0x98] sm:$0xff]  ;;  %v81_v46 = vld [vmem:[%s1691_s2 + $0xa0] sm:$0xff]  ;;  %v82_v48 = vld [vmem:[%s1691_s2 + $0xa8] sm:$0xff] }
   0xe   :  { %161 = vperm.xlu1 %1272, %v66_v21   ;;  %v1290_v49 = vld [vmem:[%s1690_s1 + $0x8] sm:$0xff]   ;;  %v83_v50 = vld [vmem:[%s1691_s2 + $0xb0] sm:$0xff]  ;;  %v84_v51 = vld [vmem:[%s1691_s2 + $0xb8] sm:$0xff] }
   0xf   :  { %v85_v52 = vld [vmem:[%s1691_s2 + $0xc0] sm:$0xff]  ;;  %v86_v53 = vld [vmem:[%s1691_s2 + $0xc8] sm:$0xff]  ;;  %v1291_v54 = vld [vmem:[%s1690_s1 + $0x10] sm:$0xff]  }
  0x10   :  { %v87_v55 = vld [vmem:[%s1691_s2 + $0xd0] sm:$0xff]  ;;  %v88_v56 = vld [vmem:[%s1691_s2 + $0xd8] sm:$0xff]  ;;  %v89_v57 = vld [vmem:[%s1691_s2 + $0xe0] sm:$0xff] }
  0x11   :  { %166 = vperm.xlu0 %1271, %v67_v22   ;;  %v90_v58 = vld [vmem:[%s1691_s2 + $0xe8] sm:$0xff]  ;;  %v1292_v59 = vld [vmem:[%s1690_s1 + $0x18] sm:$0xff]   ;;  %v91_v60 = vld [vmem:[%s1691_s2 + $0xf0] sm:$0xff] }
  0x12   :  { %171 = vperm.xlu1 %1272, %v68_v25   ;;  %v92_v61 = vld [vmem:[%s1691_s2 + $0xf8] sm:$0xff]  ;;  %v93_v62 = vld [vmem:[%s1693_s4] sm:$0xff]  ;;  %v94_v63 = vld [vmem:[%s1693_s4 + $0x8] sm:$0xff] }
  0x13   :  { %v1293_v0 = vld [vmem:[%s1690_s1 + $0x20] sm:$0xff]   ;;  %v95_v1 = vld [vmem:[%s1693_s4 + $0x10] sm:$0xff]  ;;  %v96_v2 = vld [vmem:[%s1693_s4 + $0x18] sm:$0xff] }
  0x14   :  { %1218 = vmatpush3.bf16.xpose.msra.mxu0 %v510_v10  ;;  %v1017_v3 = vld [vmem:[%s1694_s5] sm:$0xff]  ;;  %v1018_v4 = vld [vmem:[%s1694_s5 + $0x8] sm:$0xff]  ;;  %v1019_v7 = vld [vmem:[%s1694_s5 + $0x10] sm:$0xff] }
  0x15   :  { %1264 = vmatprep.subr.msk.bf16.mxu0 %vm454_vm0, %v1279_v11  ;;  %176 = vperm.xlu0 %1271, %v69_v26   ;;  %v1294_v5 = vld [vmem:[%s1690_s1 + $0x28] sm:$0xff]   ;;  %v97_v6 = vld [vmem:[%s1693_s4 + $0x20] sm:$0xff]  ;;  %v1295_v10 = vld [vmem:[%s1690_s1 + $0x30] sm:$0xff]  }
  0x16   :  { %181 = vperm.xlu1 %1272, %v70_v28   ;;  %v98_v8 = vld [vmem:[%s1693_s4 + $0x28] sm:$0xff]  ;;  %v99_v11 = vld [vmem:[%s1693_s4 + $0x30] sm:$0xff]  ;;  %v1021_v12 = vld [vmem:[%s1694_s5 + $0x20] sm:$0xff] }
  0x17   :  { %v100_v13 = vld [vmem:[%s1693_s4 + $0x38] sm:$0xff]  ;;  %v1022_v14 = vld [vmem:[%s1694_s5 + $0x28] sm:$0xff]  ;;  %v101_v18 = vld [vmem:[#allocation2] sm:$0x1] }
  0x18   :  { %v1296_v15 = vld [vmem:[%s1690_s1 + $0x38] sm:$0xff]   ;;  %v1297_v19 = vld [vmem:[%s1690_s1 + $0x40] sm:$0xff]   ;;  %v1298_v20 = vld [vmem:[%s1690_s1 + $0x48] sm:$0xff]  }
  0x19   :  { %186 = vperm.xlu0 %1271, %v71_v29   ;;  %v1299_v21 = vld [vmem:[%s1690_s1 + $0x50] sm:$0xff]   ;;  %v1300_v22 = vld [vmem:[%s1690_s1 + $0x58] sm:$0xff]  }
  0x1a   :  { %191 = vperm.xlu1 %1272, %v72_v32   ;;  %v1303_v25 = vld [vmem:[%s1690_s1 + $0x70] sm:$0xff]   ;;  %v1304_v26 = vld [vmem:[%s1690_s1 + $0x78] sm:$0xff]  }
  0x1c   :  { %1220 = vmatpush3.bf16.xpose.msra.mxu0 %v513_v16  ;;  %v1023_v16 = vld [vmem:[%s1694_s5 + $0x30] sm:$0xff] }
  0x1d   :  { %1265 = vmatprep.subr.msk.bf16.mxu0 %vm454_vm0, %v1281_v17  ;;  %196 = vperm.xlu0 %1271, %v73_v33   ;;  %v1024_v17 = vld [vmem:[%s1694_s5 + $0x38] sm:$0xff] }
  0x1e   :  { %201 = vperm.xlu1 %1272, %v74_v35  }
  0x21   :  { %206 = vperm.xlu0 %1271, %v75_v36  }
  0x22   :  { %211 = vperm.xlu1 %1272, %v76_v39  }
  0x24   :  { %1222 = vmatpush3.bf16.xpose.msra.mxu0 %v516_v23  ;;  %v1301_v23 = vld [vmem:[%s1690_s1 + $0x60] sm:$0xff]  }
  0x25   :  { %1266 = vmatprep.subr.msk.bf16.mxu0 %vm454_vm0, %v1283_v24  ;;  %216 = vperm.xlu0 %1271, %v77_v40   ;;  %v1302_v24 = vld [vmem:[%s1690_s1 + $0x68] sm:$0xff]  }
  0x26   :  { %221 = vperm.xlu1 %1272, %v78_v42  }
  0x29   :  { %226 = vperm.xlu0 %1271, %v79_v43  }
  0x2a   :  { %231 = vperm.xlu1 %1272, %v80_v45  }
  0x2c   :  { %1224 = vmatpush3.bf16.xpose.msra.mxu0 %v519_v30 }
  0x2d   :  { %1267 = vmatprep.subr.msk.bf16.mxu0 %vm454_vm0, %v1285_v31  ;;  %236 = vperm.xlu0 %1271, %v81_v46  }
  0x2e   :  { %241 = vperm.xlu1 %1272, %v82_v48  }
  0x31   :  { %246 = vperm.xlu0 %1271, %v83_v50  }
  0x32   :  { %251 = vperm.xlu1 %1272, %v84_v51  }
  0x34   :  { %1226 = vmatpush3.bf16.xpose.msra.mxu0 %v522_v37 }
  0x35   :  { %1268 = vmatprep.subr.msk.bf16.mxu0 %vm454_vm0, %v1287_v38  ;;  %256 = vperm.xlu0 %1271, %v85_v52   ;;  %v1307_v38 = vld [vmem:[%s1695_s3 + $0x4] ss:$8 sps:$4 sm:$0xff]  }
  0x36   :  { %261 = vperm.xlu1 %1272, %v86_v53   ;;  %960 = vmatprep.mubr.bf16.mxu1 %v1307_v38 }
  0x39   :  { %266 = vperm.xlu0 %1271, %v87_v55  }
  0x3a   :  { %271 = vperm.xlu1 %1272, %v88_v56  }
  0x3c   :  { %1228 = vmatpush3.bf16.xpose.msra.mxu0 %v525_v44 }
  0x3d   :  { %276 = vperm.xlu0 %1271, %v89_v57  }
  0x3e   :  { %281 = vperm.xlu1 %1272, %v90_v58  }
  0x41   :  { %286 = vperm.xlu0 %1271, %v91_v60  }
  0x42   :  { %291 = vperm.xlu1 %1272, %v92_v61  }
  0x43   :  { %1230 = vmatmul.mubr.msk.bf16.vlgmr.msra.gmra.mrb[0].mxu0 %vm454_vm0, %v1393_v9  ;;  %v1020_v9 = vld [vmem:[%s1694_s5 + $0x18] sm:$0xff] }
  0x44   :  { %1231 = vmatprep.mubr.msk.bf16.mxu0 %vm454_vm0, %v1290_v49 }
  0x45   :  { %850 = vperm.xlu0 %1271, %v93_v62  }
  0x46   :  { %855 = vperm.xlu1 %1272, %v94_v63  }
  0x49   :  { %860 = vperm.xlu0 %1271, %v95_v1  }
  0x4a   :  { %865 = vperm.xlu1 %1272, %v96_v2  }
  0x4b   :  { %1232 = vmatmul.mubr.msk.bf16.gmra.mrb[4].mxu0 %vm454_vm0, %v1290_v49 }
  0x4c   :  { %1233 = vmatprep.mubr.msk.bf16.mxu0 %vm454_vm0, %v1291_v54 }
  0x4d   :  { %1027 = vperm.xlu0 %1271, %v1017_v3  }
  0x4e   :  { %1032 = vperm.xlu1 %1272, %v1018_v4  }
  0x51   :  { %870 = vperm.xlu0 %1271, %v97_v6  }
  0x52   :  { %1037 = vperm.xlu1 %1272, %v1019_v7  }
  0x53   :  { %1234 = vmatmul.mubr.msk.bf16.gmra.mrb[8].mxu0 %vm454_vm0, %v1291_v54 }
  0x54   :  { %1235 = vmatprep.mubr.msk.bf16.mxu0 %vm454_vm0, %v1292_v59 }
  0x55   :  { %875 = vperm.xlu0 %1271, %v98_v8  }
  0x56   :  { %1042 = vperm.xlu1 %1272, %v1020_v9  }
  0x59   :  { %880 = vperm.xlu0 %1271, %v99_v11  }
  0x5a   :  { %1047 = vperm.xlu1 %1272, %v1021_v12  }
  0x5b   :  { %1236 = vmatmul.mubr.msk.bf16.gmra.mrb[12].mxu0 %vm454_vm0, %v1292_v59 }
  0x5c   :  { %1237 = vmatprep.mubr.msk.bf16.mxu0 %vm454_vm0, %v1293_v0 }
  0x5d   :  { %885 = vperm.xlu0 %1271, %v100_v13  }
  0x5e   :  { %1052 = vperm.xlu1 %1272, %v1022_v14  }
  0x61   :  { %1057 = vperm.xlu0 %1271, %v1023_v16  }
  0x62   :  { %1062 = vperm.xlu1 %1272, %v1024_v17  }
  0x63   :  { %1238 = vmatmul.mubr.msk.bf16.gmra.mrb[16].mxu0 %vm454_vm0, %v1293_v0 }
  0x64   :  { %1239 = vmatprep.mubr.msk.bf16.mxu0 %vm454_vm0, %v1294_v5 }
  0x65   :  { %1109 = vperm.xlu0 %1271, %v101_v18  }
  0x6b   :  { %1240 = vmatmul.mubr.msk.bf16.gmra.mrb[20].mxu0 %vm454_vm0, %v1294_v5 }
  0x6c   :  { %1241 = vmatprep.mubr.msk.bf16.mxu0 %vm454_vm0, %v1295_v10 }
  0x73   :  { %1242 = vmatmul.mubr.msk.bf16.gmra.mrb[24].mxu0 %vm454_vm0, %v1295_v10 }
  0x74   :  { %1243 = vmatprep.mubr.msk.bf16.mxu0 %vm454_vm0, %v1296_v15 }
  0x7b   :  { %1244 = vmatmul.mubr.msk.bf16.gmra.mrb[28].mxu0 %vm454_vm0, %v1296_v15 }
  0x7c   :  { %1245 = vmatprep.mubr.msk.bf16.mxu0 %vm454_vm0, %v1297_v19 }
  0x83   :  { %1246 = vmatmul.mubr.msk.bf16.gmra.mrb[32].mxu0 %vm454_vm0, %v1297_v19 }
  0x84   :  { %1247 = vmatprep.mubr.msk.bf16.mxu0 %vm454_vm0, %v1298_v20  ;;  %v137_v27 = vpop.permute.xlu0 %136 }
  0x85   :  { %v147_v36 = vpop.permute.xlu1 %146 }
  0x88   :  { %v142_v31 = vpop.permute.xlu0 %141 }
  0x89   :  { %v152_v48 = vpop.permute.xlu1 %151 }
  0x8b   :  { %1248 = vmatmul.mubr.msk.bf16.gmra.mrb[36].mxu0 %vm454_vm0, %v1298_v20 }
  0x8c   :  { %1249 = vmatprep.mubr.msk.bf16.mxu0 %vm454_vm0, %v1299_v21  ;;  %v157_v59 = vpop.permute.xlu0 %156 }
  0x8d   :  { %v162_v0 = vpop.permute.xlu1 %161 }
  0x90   :  { %v167_v11 = vpop.permute.xlu0 %166 }
  0x91   :  { %v172_v16 = vpop.permute.xlu1 %171 }
  0x93   :  { %1250 = vmatmul.mubr.msk.bf16.gmra.mrb[40].mxu0 %vm454_vm0, %v1299_v21 }
  0x94   :  { %1251 = vmatprep.mubr.msk.bf16.mxu0 %vm454_vm0, %v1300_v22 }
  0x9b   :  { %1252 = vmatmul.mubr.msk.bf16.gmra.mrb[44].mxu0 %vm454_vm0, %v1300_v22 }
  0x9c   :  { %1253 = vmatprep.mubr.msk.bf16.mxu0 %vm454_vm0, %v1301_v23 }
  0xa3   :  { %1254 = vmatmul.mubr.msk.bf16.gmra.mrb[48].mxu0 %vm454_vm0, %v1301_v23 }
  0xa4   :  { %1255 = vmatprep.mubr.msk.bf16.mxu0 %vm454_vm0, %v1302_v24 }
  0xab   :  { %1256 = vmatmul.mubr.msk.bf16.gmra.mrb[52].mxu0 %vm454_vm0, %v1302_v24 }
  0xac   :  { %1257 = vmatprep.mubr.msk.bf16.mxu0 %vm454_vm0, %v1303_v25 }
  0xb3   :  { %1258 = vmatmul.mubr.msk.bf16.gmra.mrb[56].mxu0 %vm454_vm0, %v1303_v25 }
  0xb4   :  { %1259 = vmatprep.mubr.msk.bf16.mxu0 %vm454_vm0, %v1304_v26 }
  0xbb   :  { %1260 = vmatmul.mubr.msk.bf16.gmra.mrb[60].mxu0 %vm454_vm0, %v1304_v26 }
 0x116   :  { %v585_v28 = vpop.f32.mrb[0].mxu0 }
 0x117   :  { %v586_v29 = vadd.f32 %v585_v28, %v137_v27  ;;  %v587_v30 = vpop.f32.mrb[1].mxu0 }
 0x118   :  { %v588_v32 = vadd.f32 %v587_v30, %v137_v27  ;;  %v589_v33 = vpop.f32.mrb[2].mxu0  ;;  %v177_v27 = vpop.permute.xlu0 %176 }
 0x119   :  { %v590_v34 = vadd.f32 %v589_v33, %v142_v31  ;;  %v591_v35 = vpop.f32.mrb[3].mxu0  ;;  %v744_v39 = vmax.f32 %v586_v29, 0.0 }
 0x11a   :  { %v592_v37 = vadd.f32 %v591_v35, %v142_v31  ;;  %v745_v41 = vmax.f32 %v588_v32, 0.0  ;;  %v182_v32 = vpop.permute.xlu1 %181 }
 0x11b   :  { %v746_v40 = vmax.f32 %v590_v34, 0.0 }
 0x11c   :  { %v747_v42 = vmax.f32 %v592_v37, 0.0 }
 0x11d   :  { %v816_v43 = vpack.c.bf16 %v746_v40, %v744_v39 }
 0x11e   :  { %v595_v44 = vpop.f32.mrb[4].mxu0  ;;  %v817_v45 = vpack.c.bf16 %v747_v42, %v745_v41 }
 0x11f   :  { %v596_v46 = vadd.f32 %v595_v44, %v147_v36  ;;  %v597_v47 = vpop.f32.mrb[5].mxu0 }
 0x120   :  { %v598_v49 = vadd.f32 %v597_v47, %v147_v36  ;;  %v599_v50 = vpop.f32.mrb[6].mxu0  ;;  %928 = vmatprep.subr.bf16.mxu1 %v817_v45 }
 0x121   :  { %v600_v51 = vadd.f32 %v599_v50, %v152_v48  ;;  %v601_v52 = vpop.f32.mrb[7].mxu0  ;;  %929 = vmatpush1.bf16.msra.mxu1 %v816_v43  ;;  %v748_v54 = vmax.f32 %v596_v46, 0.0  ;;  %v187_v43 = vpop.permute.xlu0 %186 }
 0x122   :  { %v602_v53 = vadd.f32 %v601_v52, %v152_v48  ;;  %v749_v56 = vmax.f32 %v598_v49, 0.0  ;;  %v192_v48 = vpop.permute.xlu1 %191 }
 0x123   :  { %v750_v55 = vmax.f32 %v600_v51, 0.0 }
 0x124   :  { %v751_v57 = vmax.f32 %v602_v53, 0.0 }
 0x125   :  { %v818_v58 = vpack.c.bf16 %v750_v55, %v748_v54 }
 0x126   :  { %v819_v60 = vpack.c.bf16 %v751_v57, %v749_v56  ;;  %v605_v61 = vpop.f32.mrb[8].mxu0 }
 0x127   :  { %v606_v62 = vadd.f32 %v605_v61, %v157_v59  ;;  %v607_v63 = vpop.f32.mrb[9].mxu0 }
 0x128   :  { %v608_v1 = vadd.f32 %v607_v63, %v157_v59  ;;  %v609_v2 = vpop.f32.mrb[10].mxu0  ;;  %930 = vmatprep.subr.bf16.mxu1 %v819_v60  ;;  %v197_v59 = vpop.permute.xlu0 %196 }
 0x129   :  { %v610_v3 = vadd.f32 %v609_v2, %v162_v0  ;;  %v611_v4 = vpop.f32.mrb[11].mxu0  ;;  %931 = vmatpush1.bf16.msra.mxu1 %v818_v58  ;;  %v752_v6 = vmax.f32 %v606_v62, 0.0 }
 0x12a   :  { %v612_v5 = vadd.f32 %v611_v4, %v162_v0  ;;  %v753_v8 = vmax.f32 %v608_v1, 0.0  ;;  %v202_v0 = vpop.permute.xlu1 %201 }
 0x12b   :  { %v754_v7 = vmax.f32 %v610_v3, 0.0 }
 0x12c   :  { %v755_v9 = vmax.f32 %v612_v5, 0.0 }
 0x12d   :  { %v820_v10 = vpack.c.bf16 %v754_v7, %v752_v6 }
 0x12e   :  { %v821_v12 = vpack.c.bf16 %v755_v9, %v753_v8  ;;  %v615_v13 = vpop.f32.mrb[12].mxu0 }
 0x12f   :  { %v616_v14 = vadd.f32 %v615_v13, %v167_v11  ;;  %v617_v15 = vpop.f32.mrb[13].mxu0 }
 0x130   :  { %v618_v17 = vadd.f32 %v617_v15, %v167_v11  ;;  %v619_v18 = vpop.f32.mrb[14].mxu0  ;;  %932 = vmatprep.subr.bf16.mxu1 %v821_v12  ;;  %v207_v11 = vpop.permute.xlu0 %206 }
 0x131   :  { %v620_v19 = vadd.f32 %v619_v18, %v172_v16  ;;  %v621_v20 = vpop.f32.mrb[15].mxu0  ;;  %933 = vmatpush1.bf16.msra.mxu1 %v820_v10  ;;  %v756_v22 = vmax.f32 %v616_v14, 0.0 }
 0x132   :  { %v622_v21 = vadd.f32 %v621_v20, %v172_v16  ;;  %v757_v24 = vmax.f32 %v618_v17, 0.0  ;;  %v212_v16 = vpop.permute.xlu1 %211 }
 0x133   :  { %v758_v23 = vmax.f32 %v620_v19, 0.0 }
 0x134   :  { %v759_v25 = vmax.f32 %v622_v21, 0.0 }
 0x135   :  { %v822_v26 = vpack.c.bf16 %v758_v23, %v756_v22 }
 0x136   :  { %v823_v28 = vpack.c.bf16 %v759_v25, %v757_v24  ;;  %v625_v29 = vpop.f32.mrb[16].mxu0 }
 0x137   :  { %v626_v30 = vadd.f32 %v625_v29, %v177_v27  ;;  %v627_v31 = vpop.f32.mrb[17].mxu0 }
 0x138   :  { %v628_v33 = vadd.f32 %v627_v31, %v177_v27  ;;  %v629_v34 = vpop.f32.mrb[18].mxu0  ;;  %934 = vmatprep.subr.bf16.mxu1 %v823_v28  ;;  %v217_v27 = vpop.permute.xlu0 %216 }
 0x139   :  { %v630_v35 = vadd.f32 %v629_v34, %v182_v32  ;;  %v631_v36 = vpop.f32.mrb[19].mxu0  ;;  %935 = vmatpush1.bf16.msra.mxu1 %v822_v26  ;;  %v760_v38 = vmax.f32 %v626_v30, 0.0 }
 0x13a   :  { %v632_v37 = vadd.f32 %v631_v36, %v182_v32  ;;  %v761_v40 = vmax.f32 %v628_v33, 0.0  ;;  %v222_v32 = vpop.permute.xlu1 %221 }
 0x13b   :  { %v762_v39 = vmax.f32 %v630_v35, 0.0 }
 0x13c   :  { %v763_v41 = vmax.f32 %v632_v37, 0.0 }
 0x13d   :  { %v824_v42 = vpack.c.bf16 %v762_v39, %v760_v38 }
 0x13e   :  { %v825_v44 = vpack.c.bf16 %v763_v41, %v761_v40  ;;  %v635_v45 = vpop.f32.mrb[20].mxu0 }
 0x13f   :  { %v636_v46 = vadd.f32 %v635_v45, %v187_v43  ;;  %v637_v47 = vpop.f32.mrb[21].mxu0 }
 0x140   :  { %v638_v49 = vadd.f32 %v637_v47, %v187_v43  ;;  %v639_v50 = vpop.f32.mrb[22].mxu0  ;;  %936 = vmatprep.subr.bf16.mxu1 %v825_v44  ;;  %v227_v43 = vpop.permute.xlu0 %226 }
 0x141   :  { %v640_v51 = vadd.f32 %v639_v50, %v192_v48  ;;  %v641_v52 = vpop.f32.mrb[23].mxu0  ;;  %937 = vmatpush1.bf16.msra.mxu1 %v824_v42  ;;  %v764_v54 = vmax.f32 %v636_v46, 0.0 }
 0x142   :  { %v642_v53 = vadd.f32 %v641_v52, %v192_v48  ;;  %v765_v56 = vmax.f32 %v638_v49, 0.0  ;;  %v232_v48 = vpop.permute.xlu1 %231 }
 0x143   :  { %v766_v55 = vmax.f32 %v640_v51, 0.0 }
 0x144   :  { %v767_v57 = vmax.f32 %v642_v53, 0.0 }
 0x145   :  { %v826_v58 = vpack.c.bf16 %v766_v55, %v764_v54 }
 0x146   :  { %v827_v60 = vpack.c.bf16 %v767_v57, %v765_v56  ;;  %v645_v61 = vpop.f32.mrb[24].mxu0 }
 0x147   :  { %v646_v62 = vadd.f32 %v645_v61, %v197_v59  ;;  %v647_v63 = vpop.f32.mrb[25].mxu0 }
 0x148   :  { %v648_v1 = vadd.f32 %v647_v63, %v197_v59  ;;  %v649_v2 = vpop.f32.mrb[26].mxu0  ;;  %938 = vmatprep.subr.bf16.mxu1 %v827_v60  ;;  %v237_v59 = vpop.permute.xlu0 %236 }
 0x149   :  { %v650_v3 = vadd.f32 %v649_v2, %v202_v0  ;;  %v651_v4 = vpop.f32.mrb[27].mxu0  ;;  %939 = vmatpush1.bf16.msra.mxu1 %v826_v58  ;;  %v768_v6 = vmax.f32 %v646_v62, 0.0 }
 0x14a   :  { %v652_v5 = vadd.f32 %v651_v4, %v202_v0  ;;  %v769_v8 = vmax.f32 %v648_v1, 0.0  ;;  %v242_v0 = vpop.permute.xlu1 %241 }
 0x14b   :  { %v770_v7 = vmax.f32 %v650_v3, 0.0 }
 0x14c   :  { %v771_v9 = vmax.f32 %v652_v5, 0.0 }
 0x14d   :  { %v828_v10 = vpack.c.bf16 %v770_v7, %v768_v6 }
 0x14e   :  { %v829_v12 = vpack.c.bf16 %v771_v9, %v769_v8  ;;  %v655_v13 = vpop.f32.mrb[28].mxu0 }
 0x14f   :  { %v656_v14 = vadd.f32 %v655_v13, %v207_v11  ;;  %v657_v15 = vpop.f32.mrb[29].mxu0 }
 0x150   :  { %v658_v17 = vadd.f32 %v657_v15, %v207_v11  ;;  %v659_v18 = vpop.f32.mrb[30].mxu0  ;;  %940 = vmatprep.subr.bf16.mxu1 %v829_v12  ;;  %v247_v11 = vpop.permute.xlu0 %246 }
 0x151   :  { %v660_v19 = vadd.f32 %v659_v18, %v212_v16  ;;  %v661_v20 = vpop.f32.mrb[31].mxu0  ;;  %941 = vmatpush1.bf16.msra.mxu1 %v828_v10  ;;  %v772_v22 = vmax.f32 %v656_v14, 0.0 }
 0x152   :  { %v662_v21 = vadd.f32 %v661_v20, %v212_v16  ;;  %v773_v24 = vmax.f32 %v658_v17, 0.0  ;;  %v252_v16 = vpop.permute.xlu1 %251 }
 0x153   :  { %v774_v23 = vmax.f32 %v660_v19, 0.0 }
 0x154   :  { %v775_v25 = vmax.f32 %v662_v21, 0.0 }
 0x155   :  { %v830_v26 = vpack.c.bf16 %v774_v23, %v772_v22 }
 0x156   :  { %v831_v28 = vpack.c.bf16 %v775_v25, %v773_v24  ;;  %v665_v29 = vpop.f32.mrb[32].mxu0 }
 0x157   :  { %v666_v30 = vadd.f32 %v665_v29, %v217_v27  ;;  %v667_v31 = vpop.f32.mrb[33].mxu0 }
 0x158   :  { %v668_v33 = vadd.f32 %v667_v31, %v217_v27  ;;  %v669_v34 = vpop.f32.mrb[34].mxu0  ;;  %942 = vmatprep.subr.bf16.mxu1 %v831_v28  ;;  %v257_v27 = vpop.permute.xlu0 %256 }
 0x159   :  { %v670_v35 = vadd.f32 %v669_v34, %v222_v32  ;;  %v671_v36 = vpop.f32.mrb[35].mxu0  ;;  %943 = vmatpush1.bf16.msra.mxu1 %v830_v26  ;;  %v776_v38 = vmax.f32 %v666_v30, 0.0 }
 0x15a   :  { %v672_v37 = vadd.f32 %v671_v36, %v222_v32  ;;  %v777_v40 = vmax.f32 %v668_v33, 0.0  ;;  %v262_v32 = vpop.permute.xlu1 %261 }
 0x15b   :  { %v778_v39 = vmax.f32 %v670_v35, 0.0 }
 0x15c   :  { %v779_v41 = vmax.f32 %v672_v37, 0.0 }
 0x15d   :  { %v832_v42 = vpack.c.bf16 %v778_v39, %v776_v38 }
 0x15e   :  { %v833_v44 = vpack.c.bf16 %v779_v41, %v777_v40  ;;  %v675_v45 = vpop.f32.mrb[36].mxu0 }
 0x15f   :  { %v676_v46 = vadd.f32 %v675_v45, %v227_v43  ;;  %v677_v47 = vpop.f32.mrb[37].mxu0 }
 0x160   :  { %v678_v49 = vadd.f32 %v677_v47, %v227_v43  ;;  %v679_v50 = vpop.f32.mrb[38].mxu0  ;;  %944 = vmatprep.subr.bf16.mxu1 %v833_v44  ;;  %v267_v43 = vpop.permute.xlu0 %266 }
 0x161   :  { %v680_v51 = vadd.f32 %v679_v50, %v232_v48  ;;  %v681_v52 = vpop.f32.mrb[39].mxu0  ;;  %945 = vmatpush1.bf16.msra.mxu1 %v832_v42  ;;  %v780_v54 = vmax.f32 %v676_v46, 0.0 }
 0x162   :  { %v682_v53 = vadd.f32 %v681_v52, %v232_v48  ;;  %v781_v56 = vmax.f32 %v678_v49, 0.0  ;;  %v272_v48 = vpop.permute.xlu1 %271 }
 0x163   :  { %v782_v55 = vmax.f32 %v680_v51, 0.0 }
 0x164   :  { %v783_v57 = vmax.f32 %v682_v53, 0.0 }
 0x165   :  { %v834_v58 = vpack.c.bf16 %v782_v55, %v780_v54 }
 0x166   :  { %v835_v60 = vpack.c.bf16 %v783_v57, %v781_v56  ;;  %v685_v61 = vpop.f32.mrb[40].mxu0 }
 0x167   :  { %v686_v62 = vadd.f32 %v685_v61, %v237_v59  ;;  %v687_v63 = vpop.f32.mrb[41].mxu0 }
 0x168   :  { %v688_v1 = vadd.f32 %v687_v63, %v237_v59  ;;  %v689_v2 = vpop.f32.mrb[42].mxu0  ;;  %946 = vmatprep.subr.bf16.mxu1 %v835_v60  ;;  %v277_v59 = vpop.permute.xlu0 %276 }
 0x169   :  { %v690_v3 = vadd.f32 %v689_v2, %v242_v0  ;;  %v691_v4 = vpop.f32.mrb[43].mxu0  ;;  %947 = vmatpush1.bf16.msra.mxu1 %v834_v58  ;;  %v784_v6 = vmax.f32 %v686_v62, 0.0 }
 0x16a   :  { %v692_v5 = vadd.f32 %v691_v4, %v242_v0  ;;  %v785_v8 = vmax.f32 %v688_v1, 0.0  ;;  %v282_v0 = vpop.permute.xlu1 %281 }
 0x16b   :  { %v786_v7 = vmax.f32 %v690_v3, 0.0 }
 0x16c   :  { %v787_v9 = vmax.f32 %v692_v5, 0.0 }
 0x16d   :  { %v836_v10 = vpack.c.bf16 %v786_v7, %v784_v6 }
 0x16e   :  { %v837_v12 = vpack.c.bf16 %v787_v9, %v785_v8  ;;  %v695_v13 = vpop.f32.mrb[44].mxu0 }
 0x16f   :  { %v696_v14 = vadd.f32 %v695_v13, %v247_v11  ;;  %v697_v15 = vpop.f32.mrb[45].mxu0 }
 0x170   :  { %v698_v17 = vadd.f32 %v697_v15, %v247_v11  ;;  %v699_v18 = vpop.f32.mrb[46].mxu0  ;;  %948 = vmatprep.subr.bf16.mxu1 %v837_v12  ;;  %v287_v11 = vpop.permute.xlu0 %286 }
 0x171   :  { %v700_v19 = vadd.f32 %v699_v18, %v252_v16  ;;  %v701_v20 = vpop.f32.mrb[47].mxu0  ;;  %949 = vmatpush1.bf16.msra.mxu1 %v836_v10  ;;  %v788_v22 = vmax.f32 %v696_v14, 0.0 }
 0x172   :  { %v702_v21 = vadd.f32 %v701_v20, %v252_v16  ;;  %v789_v24 = vmax.f32 %v698_v17, 0.0  ;;  %v292_v16 = vpop.permute.xlu1 %291 }
 0x173   :  { %v790_v23 = vmax.f32 %v700_v19, 0.0 }
 0x174   :  { %v791_v25 = vmax.f32 %v702_v21, 0.0 }
 0x175   :  { %v838_v26 = vpack.c.bf16 %v790_v23, %v788_v22 }
 0x176   :  { %v839_v28 = vpack.c.bf16 %v791_v25, %v789_v24  ;;  %v705_v29 = vpop.f32.mrb[48].mxu0 }
 0x177   :  { %v706_v30 = vadd.f32 %v705_v29, %v257_v27  ;;  %v707_v31 = vpop.f32.mrb[49].mxu0  ;;  %v1308_v29 = vld [vmem:[%s1695_s3 + $0x14] ss:$8 sps:$4 sm:$0xff]  }
 0x178   :  { %v708_v33 = vadd.f32 %v707_v31, %v257_v27  ;;  %v709_v34 = vpop.f32.mrb[50].mxu0  ;;  %950 = vmatprep.subr.bf16.mxu1 %v839_v28  ;;  %v1305_v28 = vld [vmem:[%s1695_s3] ss:$8 sps:$4 sm:$0xff]   ;;  %v1311_v31 = vld [vmem:[%s1695_s3 + $0x24] ss:$8 sps:$4 sm:$0xff]  }
 0x179   :  { %v710_v35 = vadd.f32 %v709_v34, %v262_v32  ;;  %v711_v36 = vpop.f32.mrb[51].mxu0  ;;  %951 = vmatpush1.bf16.msra.mxu1 %v838_v26  ;;  %v792_v38 = vmax.f32 %v706_v30, 0.0  ;;  %v1310_v30 = vld [vmem:[%s1695_s3 + $0x10] ss:$8 sps:$4 sm:$0xff]  }
 0x17a   :  { %v712_v37 = vadd.f32 %v711_v36, %v262_v32  ;;  %v793_v40 = vmax.f32 %v708_v33, 0.0  ;;  %v1313_v32 = vld [vmem:[%s1695_s3 + $0x20] ss:$8 sps:$4 sm:$0xff]   ;;  %v1314_v33 = vld [vmem:[%s1695_s3 + $0x34] ss:$8 sps:$4 sm:$0xff]   ;;  %v856_v36 = vpop.permute.xlu1 %855 }
 0x17b   :  { %v794_v39 = vmax.f32 %v710_v35, 0.0  ;;  %v1316_v34 = vld [vmem:[%s1695_s3 + $0x30] ss:$8 sps:$4 sm:$0xff]   ;;  %v851_v35 = vpop.permute.xlu0 %850 }
 0x17c   :  { %v795_v41 = vmax.f32 %v712_v37, 0.0 }
 0x17d   :  { %v840_v42 = vpack.c.bf16 %v794_v39, %v792_v38 }
 0x17e   :  { %v841_v44 = vpack.c.bf16 %v795_v41, %v793_v40  ;;  %v715_v45 = vpop.f32.mrb[52].mxu0  ;;  %v866_v38 = vpop.permute.xlu1 %865 }
 0x17f   :  { %v716_v46 = vadd.f32 %v715_v45, %v267_v43  ;;  %v717_v47 = vpop.f32.mrb[53].mxu0  ;;  %v861_v37 = vpop.permute.xlu0 %860 }
 0x180   :  { %v718_v49 = vadd.f32 %v717_v47, %v267_v43  ;;  %v719_v50 = vpop.f32.mrb[54].mxu0  ;;  %952 = vmatprep.subr.bf16.mxu1 %v841_v44 }
 0x181   :  { %v720_v51 = vadd.f32 %v719_v50, %v272_v48  ;;  %v721_v52 = vpop.f32.mrb[55].mxu0  ;;  %953 = vmatpush1.bf16.msra.mxu1 %v840_v42  ;;  %v796_v54 = vmax.f32 %v716_v46, 0.0 }
 0x182   :  { %v722_v53 = vadd.f32 %v721_v52, %v272_v48  ;;  %v797_v56 = vmax.f32 %v718_v49, 0.0  ;;  %v1033_v40 = vpop.permute.xlu1 %1032 }
 0x183   :  { %v798_v55 = vmax.f32 %v720_v51, 0.0  ;;  %v1028_v39 = vpop.permute.xlu0 %1027 }
 0x184   :  { %v799_v57 = vmax.f32 %v722_v53, 0.0 }
 0x185   :  { %v842_v58 = vpack.c.bf16 %v798_v55, %v796_v54 }
 0x186   :  { %v843_v60 = vpack.c.bf16 %v799_v57, %v797_v56  ;;  %v725_v61 = vpop.f32.mrb[56].mxu0  ;;  %v1038_v50 = vpop.permute.xlu1 %1037 }
 0x187   :  { %v726_v62 = vadd.f32 %v725_v61, %v277_v59  ;;  %v727_v63 = vpop.f32.mrb[57].mxu0  ;;  %v871_v46 = vpop.permute.xlu0 %870 }
 0x188   :  { %v728_v1 = vadd.f32 %v727_v63, %v277_v59  ;;  %v729_v2 = vpop.f32.mrb[58].mxu0  ;;  %954 = vmatprep.subr.bf16.mxu1 %v843_v60 }
 0x189   :  { %v730_v3 = vadd.f32 %v729_v2, %v282_v0  ;;  %v731_v4 = vpop.f32.mrb[59].mxu0  ;;  %955 = vmatpush1.bf16.msra.mxu1 %v842_v58  ;;  %v800_v6 = vmax.f32 %v726_v62, 0.0 }
 0x18a   :  { %v732_v5 = vadd.f32 %v731_v4, %v282_v0  ;;  %v801_v8 = vmax.f32 %v728_v1, 0.0  ;;  %v1043_v0 = vpop.permute.xlu1 %1042 }
 0x18b   :  { %v802_v7 = vmax.f32 %v730_v3, 0.0  ;;  %v876_v60 = vpop.permute.xlu0 %875 }
 0x18c   :  { %v803_v9 = vmax.f32 %v732_v5, 0.0 }
 0x18d   :  { %v844_v10 = vpack.c.bf16 %v802_v7, %v800_v6 }
 0x18e   :  { %v845_v12 = vpack.c.bf16 %v803_v9, %v801_v8  ;;  %v735_v13 = vpop.f32.mrb[60].mxu0 }
 0x18f   :  { %v736_v14 = vadd.f32 %v735_v13, %v287_v11  ;;  %v737_v15 = vpop.f32.mrb[61].mxu0  ;;  %v881_v13 = vpop.permute.xlu0 %880 }
 0x190   :  { %v738_v17 = vadd.f32 %v737_v15, %v287_v11  ;;  %v739_v18 = vpop.f32.mrb[62].mxu0  ;;  %956 = vmatprep.subr.bf16.mxu1 %v845_v12 }
 0x191   :  { %v740_v19 = vadd.f32 %v739_v18, %v292_v16  ;;  %v741_v20 = vpop.f32.mrb[63].mxu0  ;;  %957 = vmatpush1.bf16.msra.mxu1 %v844_v10  ;;  %v804_v22 = vmax.f32 %v736_v14, 0.0 }
 0x192   :  { %v742_v21 = vadd.f32 %v741_v20, %v292_v16  ;;  %v805_v24 = vmax.f32 %v738_v17, 0.0  ;;  %v1048_v16 = vpop.permute.xlu1 %1047 }
 0x193   :  { %v806_v23 = vmax.f32 %v740_v19, 0.0 }
 0x194   :  { %v807_v25 = vmax.f32 %v742_v21, 0.0 }
 0x195   :  { %v846_v26 = vpack.c.bf16 %v806_v23, %v804_v22 }
 0x196   :  { %v847_v27 = vpack.c.bf16 %v807_v25, %v805_v24 }
 0x198   :  { %958 = vmatprep.subr.bf16.mxu1 %v847_v27 }
 0x199   :  { %959 = vmatpush1.bf16.msra.mxu1 %v846_v26 }
 0x19c   :  { %961 = vmatmul.mubr.bf16.vlgmr.msra.gmra.mrb[0].mxu1 %v1305_v28 }
 0x19d   :  { %970 = vmatprep.mubr.bf16.mxu1 %v1308_v29 }
 0x1a4   :  { %971 = vmatmul.mubr.bf16.gmra.mrb[4].mxu1 %v1310_v30 }
 0x1a5   :  { %980 = vmatprep.mubr.bf16.mxu1 %v1311_v31 }
 0x1ac   :  { %981 = vmatmul.mubr.bf16.gmra.mrb[8].mxu1 %v1313_v32 }
 0x1ad   :  { %990 = vmatprep.mubr.bf16.mxu1 %v1314_v33  ;;  %v886_v33 = vpop.permute.xlu0 %885 }
 0x1b4   :  { %991 = vmatmul.mubr.bf16.gmra.mrb[12].mxu1 %v1316_v34  ;;  %v1053_v34 = vpop.permute.xlu1 %1052 }
 0x26f   :  { %v962_v41 = vpop.f32.mrb[0].mxu1 }
 0x270   :  { %v963_v42 = vadd.f32 %v962_v41, %v851_v35  ;;  %v964_v43 = vpop.f32.mrb[1].mxu1 }
 0x271   :  { %v965_v44 = vadd.f32 %v964_v43, %v851_v35  ;;  %v966_v45 = vpop.f32.mrb[2].mxu1 }
 0x272   :  { %v1001_v47 = vmax.f32 %v963_v42, 0.0  ;;  %v967_v48 = vadd.f32 %v966_v45, %v856_v36  ;;  %v968_v49 = vpop.f32.mrb[3].mxu1 }
 0x273   :  { %v1002_v51 = vmax.f32 %v965_v44, 0.0  ;;  %v969_v52 = vadd.f32 %v968_v49, %v856_v36 }
 0x274   :  { %v1003_v53 = vmax.f32 %v967_v48, 0.0  ;;  %v1065_v55 = vmul.f32 %v1028_v39, %v1001_v47 }
 0x275   :  { %v1004_v54 = vmax.f32 %v969_v52, 0.0  ;;  %v1066_v57 = vmul.f32 %v1028_v39, %v1002_v51  ;;  %v1058_v51 = vpop.permute.xlu0 %1057 }
 0x276   :  { %v1067_v56 = vmul.f32 %v1033_v40, %v1003_v53 }
 0x277   :  { %v1068_v58 = vmul.f32 %v1033_v40, %v1004_v54  ;;  %v972_v59 = vpop.f32.mrb[4].mxu1 }
 0x278   :  { %v1081_v61 = vadd.f32 %v1067_v56, %v1065_v55  ;;  %v973_v62 = vadd.f32 %v972_v59, %v861_v37  ;;  %v974_v63 = vpop.f32.mrb[5].mxu1  ;;  %v1063_v56 = vpop.permute.xlu1 %1062 }
 0x279   :  { %v1094_v1 = vadd.f32 %v1068_v58, %v1066_v57  ;;  %v975_v2 = vadd.f32 %v974_v63, %v861_v37  ;;  %v976_v3 = vpop.f32.mrb[6].mxu1  ;;  %v1112_v63 = vlaneseq }
 0x27a   :  { %v1005_v4 = vmax.f32 %v973_v62, 0.0  ;;  %v977_v5 = vadd.f32 %v976_v3, %v866_v38  ;;  %v978_v6 = vpop.f32.mrb[7].mxu1 }
 0x27b   :  { %v1006_v7 = vmax.f32 %v975_v2, 0.0  ;;  %v979_v8 = vadd.f32 %v978_v6, %v866_v38  ;;  %vm1150_vm1 = vcmp.lt.s32.totalorder %v1112_v63, 256 }
 0x27c   :  { %v1069_v9 = vmul.f32 %v1038_v50, %v1005_v4  ;;  %v1007_v10 = vmax.f32 %v977_v5, 0.0  ;;  %v1113_v4 = vshrl.u32 %v1112_v63, 7 }
 0x27d   :  { %v1070_v11 = vmul.f32 %v1038_v50, %v1006_v7  ;;  %v1008_v12 = vmax.f32 %v979_v8, 0.0 }
 0x27e   :  { %v1082_v14 = vadd.f32 %v1081_v61, %v1069_v9  ;;  %v1071_v15 = vmul.f32 %v1043_v0, %v1007_v10  ;;  %v1114_v9 = vsub.s32 0, %v1113_v4 }
 0x27f   :  { %v1095_v17 = vadd.f32 %v1094_v1, %v1070_v11  ;;  %v1072_v18 = vmul.f32 %v1043_v0, %v1008_v12  ;;  %v982_v19 = vpop.f32.mrb[8].mxu1  ;;  %v1110_v11 = vpop.permute.xlu0 %1109 }
 0x280   :  { %v1083_v20 = vadd.f32 %v1082_v14, %v1071_v15  ;;  %v983_v21 = vadd.f32 %v982_v19, %v871_v46  ;;  %v984_v22 = vpop.f32.mrb[9].mxu1  ;;  %v1115_v15 = vrot.slane %v1110_v11, %v1114_v9 }
 0x281   :  { %v1096_v23 = vadd.f32 %v1095_v17, %v1072_v18  ;;  %v985_v24 = vadd.f32 %v984_v22, %v871_v46  ;;  %v986_v25 = vpop.f32.mrb[10].mxu1 }
 0x282   :  { %v1009_v26 = vmax.f32 %v983_v21, 0.0  ;;  %v987_v27 = vadd.f32 %v986_v25, %v876_v60  ;;  %v988_v28 = vpop.f32.mrb[11].mxu1 }
 0x283   :  { %v1010_v29 = vmax.f32 %v985_v24, 0.0  ;;  %v989_v30 = vadd.f32 %v988_v28, %v876_v60 }
 0x284   :  { %v1073_v31 = vmul.f32 %v1048_v16, %v1009_v26  ;;  %v1011_v32 = vmax.f32 %v987_v27, 0.0  ;;  %v1326_v26 = vmov 1966171168  }
 0x285   :  { %v1074_v35 = vmul.f32 %v1048_v16, %v1010_v29  ;;  %v1012_v36 = vmax.f32 %v989_v30, 0.0  ;;  %v1134_v27 = vunpack.c.l.s4 %v1326_v26 }
 0x286   :  { %v1084_v37 = vadd.f32 %v1083_v20, %v1073_v31  ;;  %v1075_v38 = vmul.f32 %v1053_v34, %v1011_v32 }
 0x287   :  { %v1097_v39 = vadd.f32 %v1096_v23, %v1074_v35  ;;  %v1076_v40 = vmul.f32 %v1053_v34, %v1012_v36  ;;  %v992_v41 = vpop.f32.mrb[12].mxu1  ;;  %v1135_v28 = vunpack.c.0.s8 %v1134_v27 }
 0x288   :  { %v1085_v42 = vadd.f32 %v1084_v37, %v1075_v38  ;;  %v993_v43 = vadd.f32 %v992_v41, %v881_v13  ;;  %v994_v44 = vpop.f32.mrb[13].mxu1 }
 0x289   :  { %v1098_v45 = vadd.f32 %v1097_v39, %v1076_v40  ;;  %v995_v46 = vadd.f32 %v994_v44, %v881_v13  ;;  %v996_v47 = vpop.f32.mrb[14].mxu1  ;;  %v1138_v32 = vsub.s32 %v1135_v28, %v1113_v4 }
 0x28a   :  { %v1013_v48 = vmax.f32 %v993_v43, 0.0  ;;  %v997_v49 = vadd.f32 %v996_v47, %v886_v33  ;;  %v998_v50 = vpop.f32.mrb[15].mxu1 }
 0x28b   :  { %v1014_v52 = vmax.f32 %v995_v46, 0.0  ;;  %v999_v53 = vadd.f32 %v998_v50, %v886_v33 }
 0x28c   :  { %v1077_v54 = vmul.f32 %v1058_v51, %v1013_v48  ;;  %v1015_v55 = vmax.f32 %v997_v49, 0.0 }
 0x28d   :  { %v1078_v57 = vmul.f32 %v1058_v51, %v1014_v52  ;;  %v1016_v58 = vmax.f32 %v999_v53, 0.0 }
 0x28e   :  { %v1086_v59 = vadd.f32 %v1085_v42, %v1077_v54  ;;  %v1079_v60 = vmul.f32 %v1063_v56, %v1015_v55 }
 0x28f   :  { %v1099_v61 = vadd.f32 %v1098_v45, %v1078_v57  ;;  %v1080_v62 = vmul.f32 %v1063_v56, %v1016_v58 }
 0x290   :  { %v1087_v0 = vadd.f32 %v1086_v59, %v1079_v60 }
 0x291   :  { %v1100_v1 = vadd.f32 %v1099_v61, %v1080_v62 }
 0x292   :  { %v1088_v2 = vrot.slane %v1087_v0, 4 }
 0x293   :  { %v1101_v3 = vrot.slane %v1100_v1, 4 }
 0x294   :  { %v1089_v5 = vadd.f32 %v1088_v2, %v1087_v0 }
 0x295   :  { %v1102_v6 = vadd.f32 %v1101_v3, %v1100_v1 }
 0x296   :  { %v1090_v7 = vrot.slane %v1089_v5, 2 }
 0x297   :  { %v1103_v8 = vrot.slane %v1102_v6, 2 }
 0x298   :  { %v1091_v10 = vadd.f32 %v1090_v7, %v1089_v5 }
 0x299   :  { %v1104_v12 = vadd.f32 %v1103_v8, %v1102_v6 }
 0x29a   :  { %v1092_v13 = vrot.slane %v1091_v10, 1 }
 0x29b   :  { %v1105_v14 = vrot.slane %v1104_v12, 1 }
 0x29c   :  { %v1093_v16 = vadd.f32 %v1092_v13, %v1091_v10 }
 0x29d   :  { %v1106_v17 = vadd.f32 %v1105_v14, %v1104_v12 }
 0x29e   :  { %v1116_v18 = vadd.f32 %v1115_v15, %v1093_v16 }
 0x29f   :  { %v1117_v19 = vadd.f32 %v1115_v15, %v1106_v17 }
 0x2a0   :  { %v1118_v20 = vsub.f32 %v1116_v18, %v1116_v18 }
 0x2a1   :  { %v1119_v21 = vsub.f32 %v1117_v19, %v1117_v19 }
 0x2a2   :  { %v1120_v22 = vmul.f32 1.442695, %v1118_v20 }
 0x2a3   :  { %v1122_v23 = vmul.f32 1.442695, %v1119_v21 }
 0x2a4   :  { %1317 = vpow2.f32 %v1120_v22 }
 0x2a5   :  { %1319 = vpow2.f32 %v1122_v23 }
 0x2ae   :  { %v1318_v24 = vpop.eup %1317 }
 0x2af   :  { %v1320_v25 = vpop.eup %1319  ;;  %1321 = vrcp.f32 %v1318_v24 }
 0x2b0   :  { %1323 = vrcp.f32 %v1320_v25 }
 0x2b9   :  { %v1322_v29 = vpop.eup %1321 }
 0x2ba   :  { %v1324_v30 = vpop.eup %1323  ;;  %v1128_v31 = vmul.f32 %v1322_v29, %v1318_v24 }
 0x2bb   :  { %v1129_v33 = vmul.f32 %v1324_v30, %v1320_v25 }
 0x2bd   :  { %v1132_v34 = vcombine.low %v1128_v31, %v1129_v33 }
 0x2bf   :  { %v1139_v35 = vrot.slane %v1132_v34, %v1138_v32 }
 0x2c1   :  { %v1146_v36 = vrot.slane %v1139_v35, %v1138_v32 }
 0x2c3   :  { %1152 = vst.msk [vmem:[%s1696_s7] sm:$0x3] %vm1150_vm1, %v1146_v36 }

</bundles_post_ra>
